<compile_context>
chip_gen: v5e
topology: v5e:2x2
jax: 0.10.0
libtpu: 0.0.40
codegen_flags: <defaults>
</compile_context>

<pallas_src>
import functools

import jax
import jax.numpy as jnp
from jax.experimental import pallas as pl
from jax.experimental.pallas import tpu as pltpu


def lista_kernel(thr_ref, x_ref, wf_ref, o_ref, ux_ref, *, depth, tgt, obs):
    """One batch tile of the full LISTA recurrence.

    thr_ref : SMEM (depth,)          per-layer thresholds (scalar prefetch)
    x_ref   : VMEM (bt, M)           observed input tile
    wf_ref  : VMEM (depth, T+M, T)   fused per-layer weights [[W_i^T],[B_i^T]]
    o_ref   : VMEM (bt, T)           output u_depth tile
    ux_ref  : VMEM scratch (bt, T+M) carried [u | x]
    """
    # Place x ONCE into the fixed trailing lanes of the fused-input carry.
    ux_ref[:, tgt:tgt + obs] = x_ref[...]

    def shrink(z, t):
        # Soft-threshold: equals sign(z) * max(|z| - t, 0) for t >= 0, which
        # the module's init=True parameterization (thr = 1/L > 0) guarantees.
        # TODO(synk): learned thresholds could go negative; switch to the
        # sign/abs form if that ever becomes possible.
        return z - jnp.clip(z, -t, t)

    # Layer 0 peeled: u_0 = 0, so z_0 = x @ B_0^T (bottom M rows of Wf_0;
    # sublane-aligned slice: offset 32, size 16).
    z = jnp.dot(x_ref[...], wf_ref[0, tgt:tgt + obs, :],
                preferred_element_type=jnp.float32)
    u = shrink(z, thr_ref[0])

    # Remaining layers: ONE fused MXU matmul per layer.  depth is small and
    # static, so a full unroll is fine.
    # TODO(synk): switch to lax.fori_loop(1, depth, ..., unroll=True) with
    # dynamic wf_ref[i]/thr_ref[i] indexing if depth grows well beyond ~32.
    for i in range(1, depth):
        ux_ref[:, 0:tgt] = u                     # u already sits at lane 0
        z = jnp.dot(ux_ref[...], wf_ref[i], preferred_element_type=jnp.float32)
        u = shrink(z, thr_ref[i])

    # TODO(synk): o_ref's last dim (T=32) < 128 lanes -> masked store; pack
    # several batch tiles along lanes if the caller ever tolerates it.
    o_ref[...] = u.astype(o_ref.dtype)


def lista_forward(x, Wf, thr, *, batch_tile=None):
    """x: (B, M) f32; Wf: (depth, T+M, T) with Wf[i] = [[W_i^T],[B_i^T]];
    thr: (depth,) f32."""
    depth, tm, tgt = Wf.shape
    batch, obs = x.shape
    assert tm == tgt + obs

    if batch_tile is None:
        # TODO(synk): prefer >=128-row tiles at production batch sizes and
        # budget VMEM against v7x's 64 MiB (32 MiB scoped default).
        batch_tile = batch if batch <= 128 else 128
    assert batch % batch_tile == 0
    # (8,128) rule: the batch tile must be a multiple of 8 (f32 sublane) or
    # equal the full batch dimension.
    assert batch_tile == batch or batch_tile % 8 == 0

    grid_spec = pltpu.PrefetchScalarGridSpec(
        num_scalar_prefetch=1,                 # thresholds -> SMEM
        grid=(batch // batch_tile,),           # parallel batch tiles
        in_specs=[
            pl.BlockSpec((batch_tile, obs), lambda b, thr: (b, 0)),    # x
            # Constant index_map: the fused weight stack stays resident in
            # VMEM and is not re-fetched per batch tile.
            pl.BlockSpec((depth, tm, tgt), lambda b, thr: (0, 0, 0)),  # Wf
        ],
        out_specs=pl.BlockSpec((batch_tile, tgt), lambda b, thr: (b, 0)),
        scratch_shapes=[pltpu.VMEM((batch_tile, tm), jnp.float32)],    # [u|x]
    )

    kernel = functools.partial(lista_kernel, depth=depth, tgt=tgt, obs=obs)

    return pl.pallas_call(
        kernel,
        out_shape=jax.ShapeDtypeStruct((batch, tgt), jnp.float32),
        grid_spec=grid_spec,
        compiler_params=pltpu.CompilerParams(
            dimension_semantics=("parallel",)),   # v7x: 2 TCs split the batch
    )(thr, x, Wf)


def lista_reference(x, Wf, thr):
    """Plain-JAX reference matching the PyTorch forward exactly."""
    depth, tm, tgt = Wf.shape
    u = jnp.zeros((x.shape[0], tgt), dtype=jnp.float32)
    for i in range(depth):
        z = u @ Wf[i, :tgt, :] + x @ Wf[i, tgt:, :]
        u = jnp.sign(z) * jnp.maximum(jnp.abs(z) - thr[i], 0.0)
    return u


def max_eig_power_iter(gram, iters=200):
    """Largest eigenvalue of a symmetric PSD matrix via power iteration."""
    v = jnp.ones((gram.shape[0],), dtype=jnp.float32)
    for _ in range(iters):
        w = gram @ v
        v = w / jnp.linalg.norm(w)
    return v @ (gram @ v)


if __name__ == "__main__":
    # Small deterministic setup consistent with the module:
    #   size_observed = 16, size_target = 32, depth = 16, batch = 32
    batch, size_observed, size_target, depth = 32, 16, 32, 16

    key = jax.random.PRNGKey(0)
    k_a, k_x = jax.random.split(key)

    # Dictionary A: (size_observed, size_target).
    A = jax.random.normal(k_a, (size_observed, size_target), dtype=jnp.float32)
    gram_A = A.T @ A                               # (T, T)
    L = max_eig_power_iter(gram_A) * 1.001         # Lipschitz constant (as in __init__)

    # init=True parameterization (identical weights for every layer):
    #   weight_layer.weight = I - gram_A/L   -> W_i^T = (I - gram_A/L)^T
    #   bias_layer.weight   = A^T / L        -> B_i^T = A / L
    W_t = (jnp.eye(size_target, dtype=jnp.float32) - gram_A / L).T    # (T, T)
    B_t = A / L                                                       # (M, T)

    # Fused per-layer weight [[W_i^T],[B_i^T]] of shape (T+M, T), stacked.
    wf_layer = jnp.concatenate([W_t, B_t], axis=0)                    # (T+M, T)
    Wf = jnp.tile(wf_layer[None], (depth, 1, 1))                      # (depth, T+M, T)

    thr = jnp.ones((depth,), dtype=jnp.float32) / L                   # (depth,)

    x = jax.random.normal(k_x, (batch, size_observed), dtype=jnp.float32)

    out = lista_forward(x, Wf, thr, batch_tile=8)   # grid=(4,), 'parallel'
    out = jax.block_until_ready(out)

    ref = lista_reference(x, Wf, thr)
    assert out.shape == (batch, size_target)
    assert jnp.allclose(out, ref, atol=1e-5, rtol=1e-5), "Pallas output mismatch vs reference"

    print("KERNEL_OK")
</pallas_src>

<mosaic_0001>
module attributes {stable_mosaic.version = 11 : i64} {
  func.func @lista_kernel(%arg0: i32, %arg1: memref<16xf32, #tpu.memory_space<smem>>, %arg2: memref<8x16xf32, #tpu.memory_space<vmem>>, %arg3: memref<16x48x32xf32, #tpu.memory_space<vmem>>, %arg4: memref<8x32xf32, #tpu.memory_space<vmem>>, %arg5: memref<8x48xf32, #tpu.memory_space<vmem>>) attributes {dimension_semantics = [#tpu.dimension_semantics<parallel>], iteration_bounds = array<i64: 4>, scalar_prefetch = 1 : i64, scratch_operands = 1 : i64, tpu.core_type = #tpu.core_type<tc>, window_params = [{transform_indices = @transform_0, window_bounds = array<i64: 8, 16>}, {pipeline_mode = #tpu.pipeline_mode<synchronous>, transform_indices = @transform_1, window_bounds = array<i64: 16, 48, 32>}, {transform_indices = @transform_2, window_bounds = array<i64: 8, 32>}]} {
    %c0 = arith.constant 0 : index
    %c0_0 = arith.constant 0 : index
    %0 = vector.load %arg2[%c0, %c0_0] : memref<8x16xf32, #tpu.memory_space<vmem>>, vector<8x16xf32>
    %c0_1 = arith.constant 0 : index
    %c32 = arith.constant 32 : index
    %1 = vector.load %arg5[%c0_1, %c32] : memref<8x48xf32, #tpu.memory_space<vmem>>, vector<8x16xf32>
    tpu.vector_store %arg5[%c0_1, %c32], %0 {strides = array<i32>} : memref<8x48xf32, #tpu.memory_space<vmem>>, vector<8x16xf32>,
    %c0_2 = arith.constant 0 : index
    %c0_3 = arith.constant 0 : index
    %2 = vector.load %arg2[%c0_2, %c0_3] : memref<8x16xf32, #tpu.memory_space<vmem>>, vector<8x16xf32>
    %c0_4 = arith.constant 0 : index
    %c32_5 = arith.constant 32 : index
    %c0_6 = arith.constant 0 : index
    %3 = vector.load %arg3[%c0_4, %c32_5, %c0_6] : memref<16x48x32xf32, #tpu.memory_space<vmem>>, vector<1x16x32xf32>
    %4 = vector.shape_cast %3 : vector<1x16x32xf32> to vector<16x32xf32>
    %cst = arith.constant dense<0.000000e+00> : vector<8x32xf32>
    %5 = tpu.matmul %2, %4, %cst {dimension_numbers = #tpu.dot_dimension_numbers<[1], [0], [0], [1], [0, 0, 1, 1], [], []>} : vector<8x16xf32>, vector<16x32xf32>, vector<8x32xf32> -> vector<8x32xf32>
    %c0_7 = arith.constant 0 : index
    %6 = memref.load %arg1[%c0_7] : memref<16xf32, #tpu.memory_space<smem>>
    %cst_8 = arith.constant 0.000000e+00 : f32
    %7 = arith.subf %cst_8, %6 : f32
    %8 = vector.broadcast %7 : f32 to vector<8x32xf32>
    %9 = arith.maximumf %8, %5 : vector<8x32xf32>
    %10 = vector.broadcast %6 : f32 to vector<8x32xf32>
    %11 = arith.minimumf %10, %9 : vector<8x32xf32>
    %12 = arith.subf %5, %11 : vector<8x32xf32>
    %c0_9 = arith.constant 0 : index
    %c0_10 = arith.constant 0 : index
    %13 = vector.load %arg5[%c0_9, %c0_10] : memref<8x48xf32, #tpu.memory_space<vmem>>, vector<8x32xf32>
    tpu.vector_store %arg5[%c0_9, %c0_10], %12 {strides = array<i32>} : memref<8x48xf32, #tpu.memory_space<vmem>>, vector<8x32xf32>,
    %c0_11 = arith.constant 0 : index
    %c0_12 = arith.constant 0 : index
    %14 = vector.load %arg5[%c0_11, %c0_12] : memref<8x48xf32, #tpu.memory_space<vmem>>, vector<8x48xf32>
    %c1 = arith.constant 1 : index
    %c0_13 = arith.constant 0 : index
    %c0_14 = arith.constant 0 : index
    %15 = vector.load %arg3[%c1, %c0_13, %c0_14] : memref<16x48x32xf32, #tpu.memory_space<vmem>>, vector<1x48x32xf32>
    %16 = vector.shape_cast %15 : vector<1x48x32xf32> to vector<48x32xf32>
    %cst_15 = arith.constant dense<0.000000e+00> : vector<8x32xf32>
    %17 = tpu.matmul %14, %16, %cst_15 {dimension_numbers = #tpu.dot_dimension_numbers<[1], [0], [0], [1], [0, 0, 1, 1], [], []>} : vector<8x48xf32>, vector<48x32xf32>, vector<8x32xf32> -> vector<8x32xf32>
    %c1_16 = arith.constant 1 : index
    %18 = memref.load %arg1[%c1_16] : memref<16xf32, #tpu.memory_space<smem>>
    %cst_17 = arith.constant 0.000000e+00 : f32
    %19 = arith.subf %cst_17, %18 : f32
    %20 = vector.broadcast %19 : f32 to vector<8x32xf32>
    %21 = arith.maximumf %20, %17 : vector<8x32xf32>
    %22 = vector.broadcast %18 : f32 to vector<8x32xf32>
    %23 = arith.minimumf %22, %21 : vector<8x32xf32>
    %24 = arith.subf %17, %23 : vector<8x32xf32>
    %c0_18 = arith.constant 0 : index
    %c0_19 = arith.constant 0 : index
    %25 = vector.load %arg5[%c0_18, %c0_19] : memref<8x48xf32, #tpu.memory_space<vmem>>, vector<8x32xf32>
    tpu.vector_store %arg5[%c0_18, %c0_19], %24 {strides = array<i32>} : memref<8x48xf32, #tpu.memory_space<vmem>>, vector<8x32xf32>,
    %c0_20 = arith.constant 0 : index
    %c0_21 = arith.constant 0 : index
    %26 = vector.load %arg5[%c0_20, %c0_21] : memref<8x48xf32, #tpu.memory_space<vmem>>, vector<8x48xf32>
    %c2 = arith.constant 2 : index
    %c0_22 = arith.constant 0 : index
    %c0_23 = arith.constant 0 : index
    %27 = vector.load %arg3[%c2, %c0_22, %c0_23] : memref<16x48x32xf32, #tpu.memory_space<vmem>>, vector<1x48x32xf32>
    %28 = vector.shape_cast %27 : vector<1x48x32xf32> to vector<48x32xf32>
    %cst_24 = arith.constant dense<0.000000e+00> : vector<8x32xf32>
    %29 = tpu.matmul %26, %28, %cst_24 {dimension_numbers = #tpu.dot_dimension_numbers<[1], [0], [0], [1], [0, 0, 1, 1], [], []>} : vector<8x48xf32>, vector<48x32xf32>, vector<8x32xf32> -> vector<8x32xf32>
    %c2_25 = arith.constant 2 : index
    %30 = memref.load %arg1[%c2_25] : memref<16xf32, #tpu.memory_space<smem>>
    %cst_26 = arith.constant 0.000000e+00 : f32
    %31 = arith.subf %cst_26, %30 : f32
    %32 = vector.broadcast %31 : f32 to vector<8x32xf32>
    %33 = arith.maximumf %32, %29 : vector<8x32xf32>
    %34 = vector.broadcast %30 : f32 to vector<8x32xf32>
    %35 = arith.minimumf %34, %33 : vector<8x32xf32>
    %36 = arith.subf %29, %35 : vector<8x32xf32>
    %c0_27 = arith.constant 0 : index
    %c0_28 = arith.constant 0 : index
    %37 = vector.load %arg5[%c0_27, %c0_28] : memref<8x48xf32, #tpu.memory_space<vmem>>, vector<8x32xf32>
    tpu.vector_store %arg5[%c0_27, %c0_28], %36 {strides = array<i32>} : memref<8x48xf32, #tpu.memory_space<vmem>>, vector<8x32xf32>,
    %c0_29 = arith.constant 0 : index
    %c0_30 = arith.constant 0 : index
    %38 = vector.load %arg5[%c0_29, %c0_30] : memref<8x48xf32, #tpu.memory_space<vmem>>, vector<8x48xf32>
    %c3 = arith.constant 3 : index
    %c0_31 = arith.constant 0 : index
    %c0_32 = arith.constant 0 : index
    %39 = vector.load %arg3[%c3, %c0_31, %c0_32] : memref<16x48x32xf32, #tpu.memory_space<vmem>>, vector<1x48x32xf32>
    %40 = vector.shape_cast %39 : vector<1x48x32xf32> to vector<48x32xf32>
    %cst_33 = arith.constant dense<0.000000e+00> : vector<8x32xf32>
    %41 = tpu.matmul %38, %40, %cst_33 {dimension_numbers = #tpu.dot_dimension_numbers<[1], [0], [0], [1], [0, 0, 1, 1], [], []>} : vector<8x48xf32>, vector<48x32xf32>, vector<8x32xf32> -> vector<8x32xf32>
    %c3_34 = arith.constant 3 : index
    %42 = memref.load %arg1[%c3_34] : memref<16xf32, #tpu.memory_space<smem>>
    %cst_35 = arith.constant 0.000000e+00 : f32
    %43 = arith.subf %cst_35, %42 : f32
    %44 = vector.broadcast %43 : f32 to vector<8x32xf32>
    %45 = arith.maximumf %44, %41 : vector<8x32xf32>
    %46 = vector.broadcast %42 : f32 to vector<8x32xf32>
    %47 = arith.minimumf %46, %45 : vector<8x32xf32>
    %48 = arith.subf %41, %47 : vector<8x32xf32>
    %c0_36 = arith.constant 0 : index
    %c0_37 = arith.constant 0 : index
    %49 = vector.load %arg5[%c0_36, %c0_37] : memref<8x48xf32, #tpu.memory_space<vmem>>, vector<8x32xf32>
    tpu.vector_store %arg5[%c0_36, %c0_37], %48 {strides = array<i32>} : memref<8x48xf32, #tpu.memory_space<vmem>>, vector<8x32xf32>,
    %c0_38 = arith.constant 0 : index
    %c0_39 = arith.constant 0 : index
    %50 = vector.load %arg5[%c0_38, %c0_39] : memref<8x48xf32, #tpu.memory_space<vmem>>, vector<8x48xf32>
    %c4 = arith.constant 4 : index
    %c0_40 = arith.constant 0 : index
    %c0_41 = arith.constant 0 : index
    %51 = vector.load %arg3[%c4, %c0_40, %c0_41] : memref<16x48x32xf32, #tpu.memory_space<vmem>>, vector<1x48x32xf32>
    %52 = vector.shape_cast %51 : vector<1x48x32xf32> to vector<48x32xf32>
    %cst_42 = arith.constant dense<0.000000e+00> : vector<8x32xf32>
    %53 = tpu.matmul %50, %52, %cst_42 {dimension_numbers = #tpu.dot_dimension_numbers<[1], [0], [0], [1], [0, 0, 1, 1], [], []>} : vector<8x48xf32>, vector<48x32xf32>, vector<8x32xf32> -> vector<8x32xf32>
    %c4_43 = arith.constant 4 : index
    %54 = memref.load %arg1[%c4_43] : memref<16xf32, #tpu.memory_space<smem>>
    %cst_44 = arith.constant 0.000000e+00 : f32
    %55 = arith.subf %cst_44, %54 : f32
    %56 = vector.broadcast %55 : f32 to vector<8x32xf32>
    %57 = arith.maximumf %56, %53 : vector<8x32xf32>
    %58 = vector.broadcast %54 : f32 to vector<8x32xf32>
    %59 = arith.minimumf %58, %57 : vector<8x32xf32>
    %60 = arith.subf %53, %59 : vector<8x32xf32>
    %c0_45 = arith.constant 0 : index
    %c0_46 = arith.constant 0 : index
    %61 = vector.load %arg5[%c0_45, %c0_46] : memref<8x48xf32, #tpu.memory_space<vmem>>, vector<8x32xf32>
    tpu.vector_store %arg5[%c0_45, %c0_46], %60 {strides = array<i32>} : memref<8x48xf32, #tpu.memory_space<vmem>>, vector<8x32xf32>,
    %c0_47 = arith.constant 0 : index
    %c0_48 = arith.constant 0 : index
    %62 = vector.load %arg5[%c0_47, %c0_48] : memref<8x48xf32, #tpu.memory_space<vmem>>, vector<8x48xf32>
    %c5 = arith.constant 5 : index
    %c0_49 = arith.constant 0 : index
    %c0_50 = arith.constant 0 : index
    %63 = vector.load %arg3[%c5, %c0_49, %c0_50] : memref<16x48x32xf32, #tpu.memory_space<vmem>>, vector<1x48x32xf32>
    %64 = vector.shape_cast %63 : vector<1x48x32xf32> to vector<48x32xf32>
    %cst_51 = arith.constant dense<0.000000e+00> : vector<8x32xf32>
    %65 = tpu.matmul %62, %64, %cst_51 {dimension_numbers = #tpu.dot_dimension_numbers<[1], [0], [0], [1], [0, 0, 1, 1], [], []>} : vector<8x48xf32>, vector<48x32xf32>, vector<8x32xf32> -> vector<8x32xf32>
    %c5_52 = arith.constant 5 : index
    %66 = memref.load %arg1[%c5_52] : memref<16xf32, #tpu.memory_space<smem>>
    %cst_53 = arith.constant 0.000000e+00 : f32
    %67 = arith.subf %cst_53, %66 : f32
    %68 = vector.broadcast %67 : f32 to vector<8x32xf32>
    %69 = arith.maximumf %68, %65 : vector<8x32xf32>
    %70 = vector.broadcast %66 : f32 to vector<8x32xf32>
    %71 = arith.minimumf %70, %69 : vector<8x32xf32>
    %72 = arith.subf %65, %71 : vector<8x32xf32>
    %c0_54 = arith.constant 0 : index
    %c0_55 = arith.constant 0 : index
    %73 = vector.load %arg5[%c0_54, %c0_55] : memref<8x48xf32, #tpu.memory_space<vmem>>, vector<8x32xf32>
    tpu.vector_store %arg5[%c0_54, %c0_55], %72 {strides = array<i32>} : memref<8x48xf32, #tpu.memory_space<vmem>>, vector<8x32xf32>,
    %c0_56 = arith.constant 0 : index
    %c0_57 = arith.constant 0 : index
    %74 = vector.load %arg5[%c0_56, %c0_57] : memref<8x48xf32, #tpu.memory_space<vmem>>, vector<8x48xf32>
    %c6 = arith.constant 6 : index
    %c0_58 = arith.constant 0 : index
    %c0_59 = arith.constant 0 : index
    %75 = vector.load %arg3[%c6, %c0_58, %c0_59] : memref<16x48x32xf32, #tpu.memory_space<vmem>>, vector<1x48x32xf32>
    %76 = vector.shape_cast %75 : vector<1x48x32xf32> to vector<48x32xf32>
    %cst_60 = arith.constant dense<0.000000e+00> : vector<8x32xf32>
    %77 = tpu.matmul %74, %76, %cst_60 {dimension_numbers = #tpu.dot_dimension_numbers<[1], [0], [0], [1], [0, 0, 1, 1], [], []>} : vector<8x48xf32>, vector<48x32xf32>, vector<8x32xf32> -> vector<8x32xf32>
    %c6_61 = arith.constant 6 : index
    %78 = memref.load %arg1[%c6_61] : memref<16xf32, #tpu.memory_space<smem>>
    %cst_62 = arith.constant 0.000000e+00 : f32
    %79 = arith.subf %cst_62, %78 : f32
    %80 = vector.broadcast %79 : f32 to vector<8x32xf32>
    %81 = arith.maximumf %80, %77 : vector<8x32xf32>
    %82 = vector.broadcast %78 : f32 to vector<8x32xf32>
    %83 = arith.minimumf %82, %81 : vector<8x32xf32>
    %84 = arith.subf %77, %83 : vector<8x32xf32>
    %c0_63 = arith.constant 0 : index
    %c0_64 = arith.constant 0 : index
    %85 = vector.load %arg5[%c0_63, %c0_64] : memref<8x48xf32, #tpu.memory_space<vmem>>, vector<8x32xf32>
    tpu.vector_store %arg5[%c0_63, %c0_64], %84 {strides = array<i32>} : memref<8x48xf32, #tpu.memory_space<vmem>>, vector<8x32xf32>,
    %c0_65 = arith.constant 0 : index
    %c0_66 = arith.constant 0 : index
    %86 = vector.load %arg5[%c0_65, %c0_66] : memref<8x48xf32, #tpu.memory_space<vmem>>, vector<8x48xf32>
    %c7 = arith.constant 7 : index
    %c0_67 = arith.constant 0 : index
    %c0_68 = arith.constant 0 : index
    %87 = vector.load %arg3[%c7, %c0_67, %c0_68] : memref<16x48x32xf32, #tpu.memory_space<vmem>>, vector<1x48x32xf32>
    %88 = vector.shape_cast %87 : vector<1x48x32xf32> to vector<48x32xf32>
    %cst_69 = arith.constant dense<0.000000e+00> : vector<8x32xf32>
    %89 = tpu.matmul %86, %88, %cst_69 {dimension_numbers = #tpu.dot_dimension_numbers<[1], [0], [0], [1], [0, 0, 1, 1], [], []>} : vector<8x48xf32>, vector<48x32xf32>, vector<8x32xf32> -> vector<8x32xf32>
    %c7_70 = arith.constant 7 : index
    %90 = memref.load %arg1[%c7_70] : memref<16xf32, #tpu.memory_space<smem>>
    %cst_71 = arith.constant 0.000000e+00 : f32
    %91 = arith.subf %cst_71, %90 : f32
    %92 = vector.broadcast %91 : f32 to vector<8x32xf32>
    %93 = arith.maximumf %92, %89 : vector<8x32xf32>
    %94 = vector.broadcast %90 : f32 to vector<8x32xf32>
    %95 = arith.minimumf %94, %93 : vector<8x32xf32>
    %96 = arith.subf %89, %95 : vector<8x32xf32>
    %c0_72 = arith.constant 0 : index
    %c0_73 = arith.constant 0 : index
    %97 = vector.load %arg5[%c0_72, %c0_73] : memref<8x48xf32, #tpu.memory_space<vmem>>, vector<8x32xf32>
    tpu.vector_store %arg5[%c0_72, %c0_73], %96 {strides = array<i32>} : memref<8x48xf32, #tpu.memory_space<vmem>>, vector<8x32xf32>,
    %c0_74 = arith.constant 0 : index
    %c0_75 = arith.constant 0 : index
    %98 = vector.load %arg5[%c0_74, %c0_75] : memref<8x48xf32, #tpu.memory_space<vmem>>, vector<8x48xf32>
    %c8 = arith.constant 8 : index
    %c0_76 = arith.constant 0 : index
    %c0_77 = arith.constant 0 : index
    %99 = vector.load %arg3[%c8, %c0_76, %c0_77] : memref<16x48x32xf32, #tpu.memory_space<vmem>>, vector<1x48x32xf32>
    %100 = vector.shape_cast %99 : vector<1x48x32xf32> to vector<48x32xf32>
    %cst_78 = arith.constant dense<0.000000e+00> : vector<8x32xf32>
    %101 = tpu.matmul %98, %100, %cst_78 {dimension_numbers = #tpu.dot_dimension_numbers<[1], [0], [0], [1], [0, 0, 1, 1], [], []>} : vector<8x48xf32>, vector<48x32xf32>, vector<8x32xf32> -> vector<8x32xf32>
    %c8_79 = arith.constant 8 : index
    %102 = memref.load %arg1[%c8_79] : memref<16xf32, #tpu.memory_space<smem>>
    %cst_80 = arith.constant 0.000000e+00 : f32
    %103 = arith.subf %cst_80, %102 : f32
    %104 = vector.broadcast %103 : f32 to vector<8x32xf32>
    %105 = arith.maximumf %104, %101 : vector<8x32xf32>
    %106 = vector.broadcast %102 : f32 to vector<8x32xf32>
    %107 = arith.minimumf %106, %105 : vector<8x32xf32>
    %108 = arith.subf %101, %107 : vector<8x32xf32>
    %c0_81 = arith.constant 0 : index
    %c0_82 = arith.constant 0 : index
    %109 = vector.load %arg5[%c0_81, %c0_82] : memref<8x48xf32, #tpu.memory_space<vmem>>, vector<8x32xf32>
    tpu.vector_store %arg5[%c0_81, %c0_82], %108 {strides = array<i32>} : memref<8x48xf32, #tpu.memory_space<vmem>>, vector<8x32xf32>,
    %c0_83 = arith.constant 0 : index
    %c0_84 = arith.constant 0 : index
    %110 = vector.load %arg5[%c0_83, %c0_84] : memref<8x48xf32, #tpu.memory_space<vmem>>, vector<8x48xf32>
    %c9 = arith.constant 9 : index
    %c0_85 = arith.constant 0 : index
    %c0_86 = arith.constant 0 : index
    %111 = vector.load %arg3[%c9, %c0_85, %c0_86] : memref<16x48x32xf32, #tpu.memory_space<vmem>>, vector<1x48x32xf32>
    %112 = vector.shape_cast %111 : vector<1x48x32xf32> to vector<48x32xf32>
    %cst_87 = arith.constant dense<0.000000e+00> : vector<8x32xf32>
    %113 = tpu.matmul %110, %112, %cst_87 {dimension_numbers = #tpu.dot_dimension_numbers<[1], [0], [0], [1], [0, 0, 1, 1], [], []>} : vector<8x48xf32>, vector<48x32xf32>, vector<8x32xf32> -> vector<8x32xf32>
    %c9_88 = arith.constant 9 : index
    %114 = memref.load %arg1[%c9_88] : memref<16xf32, #tpu.memory_space<smem>>
    %cst_89 = arith.constant 0.000000e+00 : f32
    %115 = arith.subf %cst_89, %114 : f32
    %116 = vector.broadcast %115 : f32 to vector<8x32xf32>
    %117 = arith.maximumf %116, %113 : vector<8x32xf32>
    %118 = vector.broadcast %114 : f32 to vector<8x32xf32>
    %119 = arith.minimumf %118, %117 : vector<8x32xf32>
    %120 = arith.subf %113, %119 : vector<8x32xf32>
    %c0_90 = arith.constant 0 : index
    %c0_91 = arith.constant 0 : index
    %121 = vector.load %arg5[%c0_90, %c0_91] : memref<8x48xf32, #tpu.memory_space<vmem>>, vector<8x32xf32>
    tpu.vector_store %arg5[%c0_90, %c0_91], %120 {strides = array<i32>} : memref<8x48xf32, #tpu.memory_space<vmem>>, vector<8x32xf32>,
    %c0_92 = arith.constant 0 : index
    %c0_93 = arith.constant 0 : index
    %122 = vector.load %arg5[%c0_92, %c0_93] : memref<8x48xf32, #tpu.memory_space<vmem>>, vector<8x48xf32>
    %c10 = arith.constant 10 : index
    %c0_94 = arith.constant 0 : index
    %c0_95 = arith.constant 0 : index
    %123 = vector.load %arg3[%c10, %c0_94, %c0_95] : memref<16x48x32xf32, #tpu.memory_space<vmem>>, vector<1x48x32xf32>
    %124 = vector.shape_cast %123 : vector<1x48x32xf32> to vector<48x32xf32>
    %cst_96 = arith.constant dense<0.000000e+00> : vector<8x32xf32>
    %125 = tpu.matmul %122, %124, %cst_96 {dimension_numbers = #tpu.dot_dimension_numbers<[1], [0], [0], [1], [0, 0, 1, 1], [], []>} : vector<8x48xf32>, vector<48x32xf32>, vector<8x32xf32> -> vector<8x32xf32>
    %c10_97 = arith.constant 10 : index
    %126 = memref.load %arg1[%c10_97] : memref<16xf32, #tpu.memory_space<smem>>
    %cst_98 = arith.constant 0.000000e+00 : f32
    %127 = arith.subf %cst_98, %126 : f32
    %128 = vector.broadcast %127 : f32 to vector<8x32xf32>
    %129 = arith.maximumf %128, %125 : vector<8x32xf32>
    %130 = vector.broadcast %126 : f32 to vector<8x32xf32>
    %131 = arith.minimumf %130, %129 : vector<8x32xf32>
    %132 = arith.subf %125, %131 : vector<8x32xf32>
    %c0_99 = arith.constant 0 : index
    %c0_100 = arith.constant 0 : index
    %133 = vector.load %arg5[%c0_99, %c0_100] : memref<8x48xf32, #tpu.memory_space<vmem>>, vector<8x32xf32>
    tpu.vector_store %arg5[%c0_99, %c0_100], %132 {strides = array<i32>} : memref<8x48xf32, #tpu.memory_space<vmem>>, vector<8x32xf32>,
    %c0_101 = arith.constant 0 : index
    %c0_102 = arith.constant 0 : index
    %134 = vector.load %arg5[%c0_101, %c0_102] : memref<8x48xf32, #tpu.memory_space<vmem>>, vector<8x48xf32>
    %c11 = arith.constant 11 : index
    %c0_103 = arith.constant 0 : index
    %c0_104 = arith.constant 0 : index
    %135 = vector.load %arg3[%c11, %c0_103, %c0_104] : memref<16x48x32xf32, #tpu.memory_space<vmem>>, vector<1x48x32xf32>
    %136 = vector.shape_cast %135 : vector<1x48x32xf32> to vector<48x32xf32>
    %cst_105 = arith.constant dense<0.000000e+00> : vector<8x32xf32>
    %137 = tpu.matmul %134, %136, %cst_105 {dimension_numbers = #tpu.dot_dimension_numbers<[1], [0], [0], [1], [0, 0, 1, 1], [], []>} : vector<8x48xf32>, vector<48x32xf32>, vector<8x32xf32> -> vector<8x32xf32>
    %c11_106 = arith.constant 11 : index
    %138 = memref.load %arg1[%c11_106] : memref<16xf32, #tpu.memory_space<smem>>
    %cst_107 = arith.constant 0.000000e+00 : f32
    %139 = arith.subf %cst_107, %138 : f32
    %140 = vector.broadcast %139 : f32 to vector<8x32xf32>
    %141 = arith.maximumf %140, %137 : vector<8x32xf32>
    %142 = vector.broadcast %138 : f32 to vector<8x32xf32>
    %143 = arith.minimumf %142, %141 : vector<8x32xf32>
    %144 = arith.subf %137, %143 : vector<8x32xf32>
    %c0_108 = arith.constant 0 : index
    %c0_109 = arith.constant 0 : index
    %145 = vector.load %arg5[%c0_108, %c0_109] : memref<8x48xf32, #tpu.memory_space<vmem>>, vector<8x32xf32>
    tpu.vector_store %arg5[%c0_108, %c0_109], %144 {strides = array<i32>} : memref<8x48xf32, #tpu.memory_space<vmem>>, vector<8x32xf32>,
    %c0_110 = arith.constant 0 : index
    %c0_111 = arith.constant 0 : index
    %146 = vector.load %arg5[%c0_110, %c0_111] : memref<8x48xf32, #tpu.memory_space<vmem>>, vector<8x48xf32>
    %c12 = arith.constant 12 : index
    %c0_112 = arith.constant 0 : index
    %c0_113 = arith.constant 0 : index
    %147 = vector.load %arg3[%c12, %c0_112, %c0_113] : memref<16x48x32xf32, #tpu.memory_space<vmem>>, vector<1x48x32xf32>
    %148 = vector.shape_cast %147 : vector<1x48x32xf32> to vector<48x32xf32>
    %cst_114 = arith.constant dense<0.000000e+00> : vector<8x32xf32>
    %149 = tpu.matmul %146, %148, %cst_114 {dimension_numbers = #tpu.dot_dimension_numbers<[1], [0], [0], [1], [0, 0, 1, 1], [], []>} : vector<8x48xf32>, vector<48x32xf32>, vector<8x32xf32> -> vector<8x32xf32>
    %c12_115 = arith.constant 12 : index
    %150 = memref.load %arg1[%c12_115] : memref<16xf32, #tpu.memory_space<smem>>
    %cst_116 = arith.constant 0.000000e+00 : f32
    %151 = arith.subf %cst_116, %150 : f32
    %152 = vector.broadcast %151 : f32 to vector<8x32xf32>
    %153 = arith.maximumf %152, %149 : vector<8x32xf32>
    %154 = vector.broadcast %150 : f32 to vector<8x32xf32>
    %155 = arith.minimumf %154, %153 : vector<8x32xf32>
    %156 = arith.subf %149, %155 : vector<8x32xf32>
    %c0_117 = arith.constant 0 : index
    %c0_118 = arith.constant 0 : index
    %157 = vector.load %arg5[%c0_117, %c0_118] : memref<8x48xf32, #tpu.memory_space<vmem>>, vector<8x32xf32>
    tpu.vector_store %arg5[%c0_117, %c0_118], %156 {strides = array<i32>} : memref<8x48xf32, #tpu.memory_space<vmem>>, vector<8x32xf32>,
    %c0_119 = arith.constant 0 : index
    %c0_120 = arith.constant 0 : index
    %158 = vector.load %arg5[%c0_119, %c0_120] : memref<8x48xf32, #tpu.memory_space<vmem>>, vector<8x48xf32>
    %c13 = arith.constant 13 : index
    %c0_121 = arith.constant 0 : index
    %c0_122 = arith.constant 0 : index
    %159 = vector.load %arg3[%c13, %c0_121, %c0_122] : memref<16x48x32xf32, #tpu.memory_space<vmem>>, vector<1x48x32xf32>
    %160 = vector.shape_cast %159 : vector<1x48x32xf32> to vector<48x32xf32>
    %cst_123 = arith.constant dense<0.000000e+00> : vector<8x32xf32>
    %161 = tpu.matmul %158, %160, %cst_123 {dimension_numbers = #tpu.dot_dimension_numbers<[1], [0], [0], [1], [0, 0, 1, 1], [], []>} : vector<8x48xf32>, vector<48x32xf32>, vector<8x32xf32> -> vector<8x32xf32>
    %c13_124 = arith.constant 13 : index
    %162 = memref.load %arg1[%c13_124] : memref<16xf32, #tpu.memory_space<smem>>
    %cst_125 = arith.constant 0.000000e+00 : f32
    %163 = arith.subf %cst_125, %162 : f32
    %164 = vector.broadcast %163 : f32 to vector<8x32xf32>
    %165 = arith.maximumf %164, %161 : vector<8x32xf32>
    %166 = vector.broadcast %162 : f32 to vector<8x32xf32>
    %167 = arith.minimumf %166, %165 : vector<8x32xf32>
    %168 = arith.subf %161, %167 : vector<8x32xf32>
    %c0_126 = arith.constant 0 : index
    %c0_127 = arith.constant 0 : index
    %169 = vector.load %arg5[%c0_126, %c0_127] : memref<8x48xf32, #tpu.memory_space<vmem>>, vector<8x32xf32>
    tpu.vector_store %arg5[%c0_126, %c0_127], %168 {strides = array<i32>} : memref<8x48xf32, #tpu.memory_space<vmem>>, vector<8x32xf32>,
    %c0_128 = arith.constant 0 : index
    %c0_129 = arith.constant 0 : index
    %170 = vector.load %arg5[%c0_128, %c0_129] : memref<8x48xf32, #tpu.memory_space<vmem>>, vector<8x48xf32>
    %c14 = arith.constant 14 : index
    %c0_130 = arith.constant 0 : index
    %c0_131 = arith.constant 0 : index
    %171 = vector.load %arg3[%c14, %c0_130, %c0_131] : memref<16x48x32xf32, #tpu.memory_space<vmem>>, vector<1x48x32xf32>
    %172 = vector.shape_cast %171 : vector<1x48x32xf32> to vector<48x32xf32>
    %cst_132 = arith.constant dense<0.000000e+00> : vector<8x32xf32>
    %173 = tpu.matmul %170, %172, %cst_132 {dimension_numbers = #tpu.dot_dimension_numbers<[1], [0], [0], [1], [0, 0, 1, 1], [], []>} : vector<8x48xf32>, vector<48x32xf32>, vector<8x32xf32> -> vector<8x32xf32>
    %c14_133 = arith.constant 14 : index
    %174 = memref.load %arg1[%c14_133] : memref<16xf32, #tpu.memory_space<smem>>
    %cst_134 = arith.constant 0.000000e+00 : f32
    %175 = arith.subf %cst_134, %174 : f32
    %176 = vector.broadcast %175 : f32 to vector<8x32xf32>
    %177 = arith.maximumf %176, %173 : vector<8x32xf32>
    %178 = vector.broadcast %174 : f32 to vector<8x32xf32>
    %179 = arith.minimumf %178, %177 : vector<8x32xf32>
    %180 = arith.subf %173, %179 : vector<8x32xf32>
    %c0_135 = arith.constant 0 : index
    %c0_136 = arith.constant 0 : index
    %181 = vector.load %arg5[%c0_135, %c0_136] : memref<8x48xf32, #tpu.memory_space<vmem>>, vector<8x32xf32>
    tpu.vector_store %arg5[%c0_135, %c0_136], %180 {strides = array<i32>} : memref<8x48xf32, #tpu.memory_space<vmem>>, vector<8x32xf32>,
    %c0_137 = arith.constant 0 : index
    %c0_138 = arith.constant 0 : index
    %182 = vector.load %arg5[%c0_137, %c0_138] : memref<8x48xf32, #tpu.memory_space<vmem>>, vector<8x48xf32>
    %c15 = arith.constant 15 : index
    %c0_139 = arith.constant 0 : index
    %c0_140 = arith.constant 0 : index
    %183 = vector.load %arg3[%c15, %c0_139, %c0_140] : memref<16x48x32xf32, #tpu.memory_space<vmem>>, vector<1x48x32xf32>
    %184 = vector.shape_cast %183 : vector<1x48x32xf32> to vector<48x32xf32>
    %cst_141 = arith.constant dense<0.000000e+00> : vector<8x32xf32>
    %185 = tpu.matmul %182, %184, %cst_141 {dimension_numbers = #tpu.dot_dimension_numbers<[1], [0], [0], [1], [0, 0, 1, 1], [], []>} : vector<8x48xf32>, vector<48x32xf32>, vector<8x32xf32> -> vector<8x32xf32>
    %c15_142 = arith.constant 15 : index
    %186 = memref.load %arg1[%c15_142] : memref<16xf32, #tpu.memory_space<smem>>
    %cst_143 = arith.constant 0.000000e+00 : f32
    %187 = arith.subf %cst_143, %186 : f32
    %188 = vector.broadcast %187 : f32 to vector<8x32xf32>
    %189 = arith.maximumf %188, %185 : vector<8x32xf32>
    %190 = vector.broadcast %186 : f32 to vector<8x32xf32>
    %191 = arith.minimumf %190, %189 : vector<8x32xf32>
    %192 = arith.subf %185, %191 : vector<8x32xf32>
    %c0_144 = arith.constant 0 : index
    %c0_145 = arith.constant 0 : index
    %193 = vector.load %arg4[%c0_144, %c0_145] : memref<8x32xf32, #tpu.memory_space<vmem>>, vector<8x32xf32>
    tpu.vector_store %arg4[%c0_144, %c0_145], %192 {strides = array<i32>} : memref<8x32xf32, #tpu.memory_space<vmem>>, vector<8x32xf32>,
    return
  }
  func.func @transform_0(%arg0: i32, %arg1: memref<16xf32, #tpu.memory_space<smem>>) -> (i32, i32) {
    %c0_i32 = arith.constant 0 : i32
    %c0_i32_0 = arith.constant 0 : i32
    return %arg0, %c0_i32 : i32, i32
  }
  func.func @transform_1(%arg0: i32, %arg1: memref<16xf32, #tpu.memory_space<smem>>) -> (i32, i32, i32) {
    %c0_i32 = arith.constant 0 : i32
    %c0_i32_0 = arith.constant 0 : i32
    %c0_i32_1 = arith.constant 0 : i32
    %c0_i32_2 = arith.constant 0 : i32
    return %c0_i32, %c0_i32_0, %c0_i32_1 : i32, i32, i32
  }
  func.func @transform_2(%arg0: i32, %arg1: memref<16xf32, #tpu.memory_space<smem>>) -> (i32, i32) {
    %c0_i32 = arith.constant 0 : i32
    %c0_i32_0 = arith.constant 0 : i32
    return %arg0, %c0_i32 : i32, i32
  }
}

</mosaic_0001>

<bundles_post_ra>
// kernel: tpu_custom_call.1
= control target key start
LH: loop header
LB: loop body
LE: loop exit
PB: predicated region body
PF: predicated region fallthrough
CT: control target
= control target key end

     0   :  { %s1102_s15 = smov [#allocation4]   ;;  %s1519_s0 = inlined_call_operand.vmem [shape: f32[16], index: 0, kind: input, shape index: {}]   ;;  %s1520_s1 = inlined_call_operand.vmem [shape: f32[32,16], index: 1, kind: input, shape index: {}]   ;;  %s1521_s2 = inlined_call_operand.vmem [shape: f32[16,48,32], index: 2, kind: input, shape index: {}]   ;;  %s1522_s3 = inlined_call_operand.hbm [shape: f32[32,32], index: 3, kind: output, shape index: {}]  }
   0x1   :  { %s9_s14 = sshll.u32 %s1519_s0, 4  ;;  %s10_s14 = int_to_ptr.vmem [resolvable:$true] %s9_s14 }
   0x2   :  { %12 = dma.vmem_to_smem %s10_s14, 16, %s1102_s15, [#allocation3] }
   0x3   :  { %1080 = dma.done.wait [#allocation3], 16 }
   0x4   :  { %1081 = vsyncadd [#allocation3], 4294967280 }
   0x5   :  { %15 = sfence }
   0x6   :  { %16 = vsyncpa [#allocation6], 0 }
   0x7   :  { %18 = vsyncpa [#allocation6 + $0x1], 0  ;;  %s1127_s16 = smov 0   ;;  %s1129_s17 = smov 0  }
   0x8   :  { %s1131_s18 = smov 0   ;;  %s1133_s19 = smov 0  }
   0x9 LB: > { %s1148_s0 = sadd.s32 4294967295, %s1100_s19   ;;  %s852_s20 = sadd.s32 4294967294, %s1100_s19   ;;  %s1100_s19 = sphi %s1133_s19, %s1528_s19   ;;  %s1096_s18 = sphi %s1131_s18, %s1527_s18   ;;  %s1092_s17 = sphi %s1129_s17, %s1526_s17   ;;  %s1088_s16 = sphi %s1127_s16, %s1525_s16  }
   0xa   : > { %s1152_s21 = sadd.s32 1, %s1100_s19   ;;  %s78_s22 = sadd.s32 1, %s1096_s18 }
   0xb   : > { %s75_s23 = ssub.s32 %s1100_s19, %s1152_s21  ;;  %p88_p0 = scmp.ne.s32.totalorder %s1096_s18, %s1092_s17 }
   0xc   : > { %p76_p1 = scmp.eq.s32.totalorder %s75_s23, 0  ;;  %p89_p2 = scmp.eq.s32.totalorder %s1148_s0, 3 }
   0xd   : > { %p94_p3 = scmp.ne.s32.totalorder %s1092_s17, %s1088_s16  ;;  %p95_p4 = scmp.eq.s32.totalorder %s852_s20, 3 }
   0xe   : > { %s1163_s24 = scalar_select %p76_p1, %s1096_s18, %s78_s22  }
   0xf   : > { %p1165_p5 = por %p89_p2, %p88_p0  ;;  %p1169_p6 = por %p95_p4, %p94_p3 }
  0x10   : > { %p855_p7 = scmp.ge.s32.totalorder %s1100_s19, 1  ;;  %p123_p8 = scmp.lt.s32.totalorder %s1100_s19, 5 }
  0x12   : > { %p124_p9 = pnand %p855_p7, %p123_p8 }
  0x13   : > { %p144_p10 = scmp.lt.s32.totalorder (!%p124_p9), %s1148_s0, 3  ;;  %s1103_s9 = smov (!%p124_p9), 32  }
  0x14   : > { %127 = sbr.rel (%p124_p9) target bundleno = 2313 (0x909), region = 28  ;;  %s182_s30 = sld [smem:[#allocation4]] (!%p124_p9) }
  0x15   : > { %s866_s22 = sld [smem:[#allocation4 + $0x1]] (!%p124_p9) }
  0x16   : > { %s874_s12 = sld [smem:[#allocation4 + $0x2]] (!%p124_p9) }
  0x17   : > { %s882_s7 = sld [smem:[#allocation4 + $0x3]] (!%p124_p9) }
  0x18   : > { %s890_s29 = sld [smem:[#allocation4 + $0x4]] (!%p124_p9) }
  0x19   : > { %v157_v0 = vld [vmem:[%s1521_s2 + $0x28] sm:$0xff]  ;;  %v156_v1 = vld [vmem:[%s1521_s2 + $0x20] sm:$0xff]  ;;  %s145_s4 = scalar_select %p144_p10, %s1148_s0, 3  ;;  %vm158_vm0 = vcmask 130048   ;;  %v864_v3 = vld [vmem:[%s1521_s2 + $0x58] sm:$0xff]  ;;  %vm153_vm1 = vcmask 392448  }
  0x1a   : > { %176 = vmatpush.msra.mxu0 %v157_v0  ;;  %213 = vmatpush.msra.mxu1 %v864_v3  ;;  %v863_v4 = vld [vmem:[%s1521_s2 + $0x50] sm:$0xff]  ;;  %v862_v5 = vld [vmem:[%s1521_s2 + $0x48] sm:$0xff]  ;;  %v861_v6 = vld [vmem:[%s1521_s2 + $0x40] sm:$0xff]  ;;  %v186_v12 = vstv %s182_s30  ;;  %vm189_vm2 = vcmask 261120   ;;  %vm199_vm3 = vcmask 392192   ;;  %s898_s20 = sld [smem:[#allocation4 + $0x5]] }
  0x1b   : > { %s857_s5 = sshll.u32 %s145_s4, 3  ;;  %v860_v7 = vld [vmem:[%s1521_s2 + $0x38] sm:$0xff]  ;;  %v859_v8 = vld [vmem:[%s1521_s2 + $0x30] sm:$0xff]  ;;  %s183_s4 = ssub.f32 0.0, %s182_s30  ;;  %v872_v17 = vld [vmem:[%s1521_s2 + $0x88] sm:$0xff]  ;;  %v227_v25 = vstv %s866_s22 }
  0x1c   : > { %177 = vmatpush.msra.mxu0 %v156_v1  ;;  %s147_s8 = scalar_lea.vmem %s1520_s1, %s857_s5  ;;  %214 = vmatpush.msra.mxu1 %v863_v4  ;;  %v871_v18 = vld [vmem:[%s1521_s2 + $0x80] sm:$0xff]  ;;  %v870_v19 = vld [vmem:[%s1521_s2 + $0x78] sm:$0xff]  ;;  %v869_v20 = vld [vmem:[%s1521_s2 + $0x70] sm:$0xff]  ;;  %s224_s23 = ssub.f32 0.0, %s866_s22  ;;  %v266_v38 = vstv %s874_s12 }
  0x1d   : > { %v155_v2 = vld [vmem:[%s147_s8] sm:$0xff]  ;;  %v184_v10 = vstv %s183_s4  ;;  %252 = vmatpush.msra.mxu2 %v872_v17  ;;  %v868_v21 = vld [vmem:[%s1521_s2 + $0x68] sm:$0xff]  ;;  %v880_v30 = vld [vmem:[%s1521_s2 + $0xb8] sm:$0xff]  ;;  %s263_s13 = ssub.f32 0.0, %s874_s12 }
  0x1e   : > { %858 = vmatmul.msk.f32.vlgmr.msra.gmra.mxu0 %vm158_vm0, %v155_v2  ;;  %150 = vrot.lane.b32.xlu0 %v155_v2, %s1103_s9  ;;  %v867_v22 = vld [vmem:[%s1521_s2 + $0x60] sm:$0xff]  ;;  %v225_v23 = vstv %s224_s23  ;;  %v879_v31 = vld [vmem:[%s1521_s2 + $0xb0] sm:$0xff]  ;;  %s302_s8 = ssub.f32 0.0, %s882_s7 }
  0x1f   : > { %215 = vmatpush.msra.mxu1 %v862_v5  ;;  %253 = vmatpush.msra.mxu2 %v871_v18  ;;  %v878_v32 = vld [vmem:[%s1521_s2 + $0xa8] sm:$0xff]  ;;  %v877_v33 = vld [vmem:[%s1521_s2 + $0xa0] sm:$0xff]  ;;  %v876_v34 = vld [vmem:[%s1521_s2 + $0x98] sm:$0xff]  ;;  %v264_v36 = vstv %s263_s13  ;;  %s341_s30 = ssub.f32 0.0, %s890_s29 }
  0x20   : > { %291 = vmatpush.msra.mxu3 %v880_v30  ;;  %v875_v35 = vld [vmem:[%s1521_s2 + $0x90] sm:$0xff]  ;;  %v888_v43 = vld [vmem:[%s1521_s2 + $0xe8] sm:$0xff]  ;;  %v887_v44 = vld [vmem:[%s1521_s2 + $0xe0] sm:$0xff]  ;;  %v303_v49 = vstv %s302_s8  ;;  %s380_s22 = ssub.f32 0.0, %s898_s20 }
  0x21   : > { %216 = vmatpush.msra.mxu1 %v861_v6  ;;  %254 = vmatpush.msra.mxu2 %v870_v19  ;;  %v886_v45 = vld [vmem:[%s1521_s2 + $0xd8] sm:$0xff]  ;;  %v885_v46 = vld [vmem:[%s1521_s2 + $0xd0] sm:$0xff]  ;;  %v884_v47 = vld [vmem:[%s1521_s2 + $0xc8] sm:$0xff]  ;;  %v305_v51 = vstv %s882_s7  ;;  %s906_s11 = sld [smem:[#allocation4 + $0x6]] }
  0x22   : > { %292 = vmatpush.msra.mxu3 %v879_v31  ;;  %330 = vmatpush.msrb.mxu0 %v888_v43  ;;  %v883_v48 = vld [vmem:[%s1521_s2 + $0xc0] sm:$0xff]  ;;  %v896_v56 = vld [vmem:[%s1521_s2 + $0x118] sm:$0xff]  ;;  %v895_v57 = vld [vmem:[%s1521_s2 + $0x110] sm:$0xff]  ;;  %v342_v62 = vstv %s341_s30  ;;  %s914_s6 = sld [smem:[#allocation4 + $0x7]] }
  0x23   : > { %217 = vmatpush.msra.mxu1 %v860_v7  ;;  %255 = vmatpush.msra.mxu2 %v869_v20  ;;  %v894_v58 = vld [vmem:[%s1521_s2 + $0x108] sm:$0xff]  ;;  %v893_v59 = vld [vmem:[%s1521_s2 + $0x100] sm:$0xff]  ;;  %v892_v60 = vld [vmem:[%s1521_s2 + $0xf8] sm:$0xff]  ;;  %v344_v0 = vstv %s890_s29  ;;  %s922_s28 = sld [smem:[#allocation4 + $0x8]] }
  0x24   : > { %293 = vmatpush.msra.mxu3 %v878_v32  ;;  %331 = vmatpush.msrb.mxu0 %v887_v44  ;;  %v891_v61 = vld [vmem:[%s1521_s2 + $0xf0] sm:$0xff]  ;;  %v904_v5 = vld [vmem:[%s1521_s2 + $0x148] sm:$0xff]  ;;  %v903_v6 = vld [vmem:[%s1521_s2 + $0x140] sm:$0xff]  ;;  %s930_s15 = sld [smem:[#allocation4 + $0x9]] }
  0x25   : > { %218 = vmatpush.msra.mxu1 %v859_v8  ;;  %256 = vmatpush.msra.mxu2 %v868_v21  ;;  %v902_v7 = vld [vmem:[%s1521_s2 + $0x138] sm:$0xff]  ;;  %v901_v8 = vld [vmem:[%s1521_s2 + $0x130] sm:$0xff]  ;;  %v910_v20 = vld [vmem:[%s1521_s2 + $0x168] sm:$0xff]  ;;  %s938_s10 = sld [smem:[#allocation4 + $0xa]] }
  0x26   : > { %294 = vmatpush.msra.mxu3 %v877_v33  ;;  %332 = vmatpush.msrb.mxu0 %v886_v45  ;;  %v912_v18 = vld [vmem:[%s1521_s2 + $0x178] sm:$0xff]  ;;  %v911_v19 = vld [vmem:[%s1521_s2 + $0x170] sm:$0xff]  ;;  %v909_v21 = vld [vmem:[%s1521_s2 + $0x160] sm:$0xff]  ;;  %s946_s5 = sld [smem:[#allocation4 + $0xb]] }
  0x27   : > { %257 = vmatpush.msra.mxu2 %v867_v22  ;;  %369 = vmatpush.msrb.mxu1 %v896_v56  ;;  %v908_v22 = vld [vmem:[%s1521_s2 + $0x158] sm:$0xff]  ;;  %s419_s12 = ssub.f32 0.0, %s906_s11  ;;  %v920_v31 = vld [vmem:[%s1521_s2 + $0x1a8] sm:$0xff]  ;;  %v919_v32 = vld [vmem:[%s1521_s2 + $0x1a0] sm:$0xff] }
  0x28   : > { %295 = vmatpush.msra.mxu3 %v876_v34  ;;  %333 = vmatpush.msrb.mxu0 %v885_v46  ;;  %v918_v33 = vld [vmem:[%s1521_s2 + $0x198] sm:$0xff]  ;;  %v917_v34 = vld [vmem:[%s1521_s2 + $0x190] sm:$0xff]  ;;  %s458_s7 = ssub.f32 0.0, %s914_s6  ;;  %v926_v46 = vld [vmem:[%s1521_s2 + $0x1c8] sm:$0xff] }
  0x29   : > { %370 = vmatpush.msrb.mxu1 %v895_v57  ;;  %408 = vmatpush.msrb.mxu2 %v904_v5  ;;  %v928_v44 = vld [vmem:[%s1521_s2 + $0x1d8] sm:$0xff]  ;;  %v927_v45 = vld [vmem:[%s1521_s2 + $0x1d0] sm:$0xff]  ;;  %s497_s29 = ssub.f32 0.0, %s922_s28  ;;  %v936_v57 = vld [vmem:[%s1521_s2 + $0x208] sm:$0xff] }
  0x2a   : > { %296 = vmatpush.msra.mxu3 %v875_v35  ;;  %334 = vmatpush.msrb.mxu0 %v884_v47  ;;  %v916_v35 = vld [vmem:[%s1521_s2 + $0x188] sm:$0xff]  ;;  %v925_v47 = vld [vmem:[%s1521_s2 + $0x1c0] sm:$0xff]  ;;  %s954_s27 = sld [smem:[#allocation4 + $0xc]] }
  0x2b   : > { %371 = vmatpush.msrb.mxu1 %v894_v58  ;;  %409 = vmatpush.msrb.mxu2 %v903_v6  ;;  %v935_v58 = vld [vmem:[%s1521_s2 + $0x200] sm:$0xff]  ;;  %v944_v6 = vld [vmem:[%s1521_s2 + $0x238] sm:$0xff]  ;;  %s962_s14 = sld [smem:[#allocation4 + $0xd]] }
  0x2c   : > { %335 = vmatpush.msrb.mxu0 %v883_v48  ;;  %447 = vmatpush.msrb.mxu3 %v912_v18  ;;  %v924_v48 = vld [vmem:[%s1521_s2 + $0x1b8] sm:$0xff]  ;;  %s970_s9 = sld [smem:[#allocation4 + $0xe]] }
  0x2d   : > { %372 = vmatpush.msrb.mxu1 %v893_v59  ;;  %410 = vmatpush.msrb.mxu2 %v902_v7  ;;  %v934_v59 = vld [vmem:[%s1521_s2 + $0x1f8] sm:$0xff]  ;;  %v943_v7 = vld [vmem:[%s1521_s2 + $0x230] sm:$0xff] }
  0x2e   : > { %448 = vmatpush.msrb.mxu3 %v911_v19  ;;  %486 = vmatpush.msra.mxu0 %v920_v31  ;;  %v952_v19 = vld [vmem:[%s1521_s2 + $0x268] sm:$0xff] }
  0x2f   : > { %373 = vmatpush.msrb.mxu1 %v892_v60  ;;  %411 = vmatpush.msrb.mxu2 %v901_v8  ;;  %v933_v60 = vld [vmem:[%s1521_s2 + $0x1f0] sm:$0xff]  ;;  %v942_v8 = vld [vmem:[%s1521_s2 + $0x228] sm:$0xff] }
  0x30   : > { %449 = vmatpush.msrb.mxu3 %v910_v20  ;;  %487 = vmatpush.msra.mxu0 %v919_v32  ;;  %v951_v20 = vld [vmem:[%s1521_s2 + $0x260] sm:$0xff]  ;;  %v960_v32 = vld [vmem:[%s1521_s2 + $0x298] sm:$0xff] }
  0x31   : > { %374 = vmatpush.msrb.mxu1 %v891_v61  ;;  %v932_v61 = vld [vmem:[%s1521_s2 + $0x1e8] sm:$0xff] }
  0x32   : > { %450 = vmatpush.msrb.mxu3 %v909_v21  ;;  %488 = vmatpush.msra.mxu0 %v918_v33  ;;  %v950_v21 = vld [vmem:[%s1521_s2 + $0x258] sm:$0xff]  ;;  %v959_v33 = vld [vmem:[%s1521_s2 + $0x290] sm:$0xff] }
  0x34   : > { %451 = vmatpush.msrb.mxu3 %v908_v22  ;;  %489 = vmatpush.msra.mxu0 %v917_v34  ;;  %v949_v22 = vld [vmem:[%s1521_s2 + $0x250] sm:$0xff]  ;;  %v958_v34 = vld [vmem:[%s1521_s2 + $0x288] sm:$0xff] }
  0x36   : > { %490 = vmatpush.msra.mxu0 %v916_v35  ;;  %v957_v35 = vld [vmem:[%s1521_s2 + $0x280] sm:$0xff] }
  0x90   : > { %v151_v9 = vpop.permute.xlu0 %150 }
  0x91   : > { %154 = vst.msk [vmem:[#allocation2] sm:$0xff] %vm153_vm1, %v151_v9  ;;  %v900_v9 = vld [vmem:[%s1521_s2 + $0x128] sm:$0xff] }
  0x92   : > { %412 = vmatpush.msrb.mxu2 %v900_v9  ;;  %v941_v9 = vld [vmem:[%s1521_s2 + $0x220] sm:$0xff] }
  0x9b   : > { %v179_v11 = vpop.f32.mrf.mxu0 }
  0x9c   : > { %v185_v13 = vmax.f32 %v184_v10, %v179_v11  ;;  %v899_v10 = vld [vmem:[%s1521_s2 + $0x120] sm:$0xff] }
  0x9d   : > { %413 = vmatpush.msrb.mxu2 %v899_v10  ;;  %v940_v10 = vld [vmem:[%s1521_s2 + $0x218] sm:$0xff] }
  0x9e   : > { %v187_v14 = vmin.f32 %v186_v12, %v185_v13  ;;  %v383_v13 = vstv %s898_s20  ;;  %s536_s20 = ssub.f32 0.0, %s930_s15 }
  0xa0   : > { %v188_v15 = vsub.f32 %v179_v11, %v187_v14  ;;  %v381_v11 = vstv %s380_s22 }
  0xa2   : > { %190 = vst.msk [vmem:[#allocation2] sm:$0xff] %vm189_vm2, %v188_v15 }
  0xa9   : > { %v191_v16 = vld [vmem:[#allocation2] sm:$0xff] }
  0xaa   : > { %865 = vmatmul.msk.f32.vlgmr.msra.gmra.mxu1 %vm199_vm3, %v191_v16 }
  0xab   : > { %525 = vmatpush.msra.mxu1 %v928_v44 }
  0xad   : > { %526 = vmatpush.msra.mxu1 %v927_v45  ;;  %v968_v45 = vld [vmem:[%s1521_s2 + $0x2c8] sm:$0xff] }
  0xaf   : > { %527 = vmatpush.msra.mxu1 %v926_v46  ;;  %v967_v46 = vld [vmem:[%s1521_s2 + $0x2c0] sm:$0xff] }
  0xb1   : > { %528 = vmatpush.msra.mxu1 %v925_v47  ;;  %v966_v47 = vld [vmem:[%s1521_s2 + $0x2b8] sm:$0xff] }
  0xb3   : > { %529 = vmatpush.msra.mxu1 %v924_v48  ;;  %v965_v48 = vld [vmem:[%s1521_s2 + $0x2b0] sm:$0xff] }
 0x127   : > { %v220_v24 = vpop.f32.mrf.mxu1 }
 0x128   : > { %v226_v26 = vmax.f32 %v225_v23, %v220_v24  ;;  %v907_v23 = vld [vmem:[%s1521_s2 + $0x150] sm:$0xff] }
 0x129   : > { %452 = vmatpush.msrb.mxu3 %v907_v23  ;;  %v948_v23 = vld [vmem:[%s1521_s2 + $0x248] sm:$0xff] }
 0x12a   : > { %v228_v27 = vmin.f32 %v227_v25, %v226_v26  ;;  %v422_v26 = vstv %s906_s11  ;;  %s575_s11 = ssub.f32 0.0, %s938_s10 }
 0x12c   : > { %v229_v28 = vsub.f32 %v220_v24, %v228_v27  ;;  %v420_v24 = vstv %s419_s12  ;;  %s141_s12 = sand.u32 1, %s1092_s17  }
 0x12d   : > { %s778_s30 = scalar_lea.sflag [#allocation6], %s141_s12 }
 0x12e   : > { %230 = vst.msk [vmem:[#allocation2] sm:$0xff] %vm189_vm2, %v229_v28 }
 0x135   : > { %v231_v29 = vld [vmem:[#allocation2] sm:$0xff] }
 0x136   : > { %873 = vmatmul.msk.f32.vlgmr.msra.gmra.mxu2 %vm199_vm3, %v231_v29 }
 0x137   : > { %564 = vmatpush.msra.mxu2 %v936_v57 }
 0x139   : > { %565 = vmatpush.msra.mxu2 %v935_v58  ;;  %v976_v58 = vld [vmem:[%s1521_s2 + $0x2f8] sm:$0xff] }
 0x13b   : > { %566 = vmatpush.msra.mxu2 %v934_v59  ;;  %v975_v59 = vld [vmem:[%s1521_s2 + $0x2f0] sm:$0xff] }
 0x13d   : > { %567 = vmatpush.msra.mxu2 %v933_v60  ;;  %v974_v60 = vld [vmem:[%s1521_s2 + $0x2e8] sm:$0xff] }
 0x13f   : > { %568 = vmatpush.msra.mxu2 %v932_v61  ;;  %v973_v61 = vld [vmem:[%s1521_s2 + $0x2e0] sm:$0xff] }
 0x1b9   : > { %v259_v37 = vpop.f32.mrf.mxu2 }
 0x1ba   : > { %v265_v39 = vmax.f32 %v264_v36, %v259_v37  ;;  %v915_v36 = vld [vmem:[%s1521_s2 + $0x180] sm:$0xff] }
 0x1bb   : > { %491 = vmatpush.msra.mxu0 %v915_v36  ;;  %v956_v36 = vld [vmem:[%s1521_s2 + $0x278] sm:$0xff] }
 0x1bc   : > { %v267_v40 = vmin.f32 %v266_v38, %v265_v39  ;;  %v461_v39 = vstv %s914_s6  ;;  %s614_s6 = ssub.f32 0.0, %s946_s5 }
 0x1be   : > { %v268_v41 = vsub.f32 %v259_v37, %v267_v40  ;;  %v459_v37 = vstv %s458_s7  ;;  %s1056_s7 = scalar_lea.hbm %s1522_s3, 32 }
 0x1c0   : > { %269 = vst.msk [vmem:[#allocation2] sm:$0xff] %vm189_vm2, %v268_v41 }
 0x1c7   : > { %v270_v42 = vld [vmem:[#allocation2] sm:$0xff] }
 0x1c8   : > { %881 = vmatmul.msk.f32.vlgmr.msra.gmra.mxu3 %vm199_vm3, %v270_v42 }
 0x1c9   : > { %603 = vmatpush.msra.mxu3 %v944_v6 }
 0x1cb   : > { %604 = vmatpush.msra.mxu3 %v943_v7 }
 0x1cd   : > { %605 = vmatpush.msra.mxu3 %v942_v8 }
 0x1cf   : > { %606 = vmatpush.msra.mxu3 %v941_v9 }
 0x1d1   : > { %607 = vmatpush.msra.mxu3 %v940_v10 }
 0x24b   : > { %v298_v50 = vpop.f32.mrf.mxu3 }
 0x24c   : > { %v304_v52 = vmax.f32 %v303_v49, %v298_v50  ;;  %v923_v49 = vld [vmem:[%s1521_s2 + $0x1b0] sm:$0xff] }
 0x24d   : > { %530 = vmatpush.msra.mxu1 %v923_v49  ;;  %v964_v49 = vld [vmem:[%s1521_s2 + $0x2a8] sm:$0xff] }
 0x24e   : > { %v306_v53 = vmin.f32 %v305_v51, %v304_v52  ;;  %v500_v52 = vstv %s922_s28  ;;  %s653_s28 = ssub.f32 0.0, %s954_s27 }
 0x250   : > { %v307_v54 = vsub.f32 %v298_v50, %v306_v53  ;;  %v498_v50 = vstv %s497_s29 }
 0x252   : > { %308 = vst.msk [vmem:[#allocation2] sm:$0xff] %vm189_vm2, %v307_v54 }
 0x259   : > { %v309_v55 = vld [vmem:[#allocation2] sm:$0xff] }
 0x25a   : > { %889 = vmatmul.msk.f32.vlgmr.msrb.gmra.mxu0 %vm199_vm3, %v309_v55 }
 0x25b   : > { %642 = vmatpush.msrb.mxu0 %v952_v19 }
 0x25d   : > { %643 = vmatpush.msrb.mxu0 %v951_v20 }
 0x25f   : > { %644 = vmatpush.msrb.mxu0 %v950_v21 }
 0x261   : > { %645 = vmatpush.msrb.mxu0 %v949_v22 }
 0x263   : > { %646 = vmatpush.msrb.mxu0 %v948_v23 }
 0x2d7   : > { %v337_v63 = vpop.f32.mrf.mxu0 }
 0x2d8   : > { %v343_v1 = vmax.f32 %v342_v62, %v337_v63  ;;  %v931_v62 = vld [vmem:[%s1521_s2 + $0x1e0] sm:$0xff] }
 0x2d9   : > { %569 = vmatpush.msra.mxu2 %v931_v62  ;;  %v972_v62 = vld [vmem:[%s1521_s2 + $0x2d8] sm:$0xff] }
 0x2da   : > { %v345_v2 = vmin.f32 %v344_v0, %v343_v1  ;;  %v539_v1 = vstv %s930_s15  ;;  %s692_s15 = ssub.f32 0.0, %s962_s14 }
 0x2dc   : > { %v346_v3 = vsub.f32 %v337_v63, %v345_v2  ;;  %v537_v63 = vstv %s536_s20 }
 0x2de   : > { %347 = vst.msk [vmem:[#allocation2] sm:$0xff] %vm189_vm2, %v346_v3 }
 0x2e5   : > { %v348_v4 = vld [vmem:[#allocation2] sm:$0xff] }
 0x2e6   : > { %897 = vmatmul.msk.f32.vlgmr.msrb.gmra.mxu1 %vm199_vm3, %v348_v4 }
 0x2e7   : > { %681 = vmatpush.msrb.mxu1 %v960_v32 }
 0x2e9   : > { %682 = vmatpush.msrb.mxu1 %v959_v33 }
 0x2eb   : > { %683 = vmatpush.msrb.mxu1 %v958_v34 }
 0x2ed   : > { %684 = vmatpush.msrb.mxu1 %v957_v35 }
 0x2ef   : > { %685 = vmatpush.msrb.mxu1 %v956_v36 }
 0x363   : > { %v376_v12 = vpop.f32.mrf.mxu1 }
 0x364   : > { %v382_v14 = vmax.f32 %v381_v11, %v376_v12  ;;  %v939_v11 = vld [vmem:[%s1521_s2 + $0x210] sm:$0xff] }
 0x365   : > { %608 = vmatpush.msra.mxu3 %v939_v11 }
 0x366   : > { %v384_v15 = vmin.f32 %v383_v13, %v382_v14  ;;  %v578_v14 = vstv %s938_s10  ;;  %s731_s10 = ssub.f32 0.0, %s970_s9 }
 0x368   : > { %v385_v16 = vsub.f32 %v376_v12, %v384_v15  ;;  %v576_v12 = vstv %s575_s11  ;;  %s978_s11 = sld [smem:[#allocation4 + $0xf]] }
 0x36a   : > { %386 = vst.msk [vmem:[#allocation2] sm:$0xff] %vm189_vm2, %v385_v16 }
 0x36e   : > { %s770_s13 = ssub.f32 0.0, %s978_s11  ;;  %v773_v9 = vstv %s978_s11 }
 0x370   : > { %v771_v7 = vstv %s770_s13 }
 0x371   : > { %v387_v17 = vld [vmem:[#allocation2] sm:$0xff] }
 0x372   : > { %905 = vmatmul.msk.f32.vlgmr.msrb.gmra.mxu2 %vm199_vm3, %v387_v17 }
 0x373   : > { %720 = vmatpush.msrb.mxu2 %v968_v45 }
 0x375   : > { %721 = vmatpush.msrb.mxu2 %v967_v46 }
 0x377   : > { %722 = vmatpush.msrb.mxu2 %v966_v47 }
 0x379   : > { %723 = vmatpush.msrb.mxu2 %v965_v48 }
 0x37b   : > { %724 = vmatpush.msrb.mxu2 %v964_v49 }
 0x3f5   : > { %v415_v25 = vpop.f32.mrf.mxu2 }
 0x3f6   : > { %v421_v27 = vmax.f32 %v420_v24, %v415_v25  ;;  %v947_v24 = vld [vmem:[%s1521_s2 + $0x240] sm:$0xff] }
 0x3f7   : > { %647 = vmatpush.msrb.mxu0 %v947_v24 }
 0x3f8   : > { %v423_v28 = vmin.f32 %v422_v26, %v421_v27  ;;  %v617_v27 = vstv %s946_s5 }
 0x3fa   : > { %v424_v29 = vsub.f32 %v415_v25, %v423_v28  ;;  %v615_v25 = vstv %s614_s6 }
 0x3fc   : > { %425 = vst.msk [vmem:[#allocation2] sm:$0xff] %vm189_vm2, %v424_v29 }
 0x403   : > { %v426_v30 = vld [vmem:[#allocation2] sm:$0xff] }
 0x404   : > { %913 = vmatmul.msk.f32.vlgmr.msrb.gmra.mxu3 %vm199_vm3, %v426_v30 }
 0x405   : > { %759 = vmatpush.msrb.mxu3 %v976_v58 }
 0x407   : > { %760 = vmatpush.msrb.mxu3 %v975_v59 }
 0x409   : > { %761 = vmatpush.msrb.mxu3 %v974_v60 }
 0x40b   : > { %762 = vmatpush.msrb.mxu3 %v973_v61 }
 0x40d   : > { %763 = vmatpush.msrb.mxu3 %v972_v62 }
 0x487   : > { %v454_v38 = vpop.f32.mrf.mxu3 }
 0x488   : > { %v460_v40 = vmax.f32 %v459_v37, %v454_v38  ;;  %v955_v37 = vld [vmem:[%s1521_s2 + $0x270] sm:$0xff] }
 0x489   : > { %686 = vmatpush.msrb.mxu1 %v955_v37 }
 0x48a   : > { %v462_v41 = vmin.f32 %v461_v39, %v460_v40  ;;  %v656_v40 = vstv %s954_s27 }
 0x48c   : > { %v463_v42 = vsub.f32 %v454_v38, %v462_v41  ;;  %v654_v38 = vstv %s653_s28 }
 0x48e   : > { %464 = vst.msk [vmem:[#allocation2] sm:$0xff] %vm189_vm2, %v463_v42 }
 0x495   : > { %v465_v43 = vld [vmem:[#allocation2] sm:$0xff] }
 0x496   : > { %921 = vmatmul.msk.f32.vlgmr.msra.gmra.mxu0 %vm199_vm3, %v465_v43 }
 0x513   : > { %v493_v51 = vpop.f32.mrf.mxu0 }
 0x514   : > { %v499_v53 = vmax.f32 %v498_v50, %v493_v51  ;;  %v963_v50 = vld [vmem:[%s1521_s2 + $0x2a0] sm:$0xff] }
 0x515   : > { %725 = vmatpush.msrb.mxu2 %v963_v50 }
 0x516   : > { %v501_v54 = vmin.f32 %v500_v52, %v499_v53  ;;  %v695_v53 = vstv %s962_s14  ;;  %s856_s14 = sshll.u32 %s141_s12, 3 }
 0x517   : > { %s143_s27 = scalar_lea.vmem [#allocation5], %s856_s14 }
 0x518   : > { %v502_v55 = vsub.f32 %v493_v51, %v501_v54  ;;  %v693_v51 = vstv %s692_s15  ;;  %s980_s15 = sshll.u32 %s1148_s0, 3  ;;  %s790_s28 = sshll.u32 %s143_s27, 4  ;;  %s791_s28 = int_to_ptr.vmem [resolvable:$true] %s790_s28 }
 0x519   : > { %s788_s23 = scalar_lea.hbm %s1522_s3, %s980_s15 }
 0x51a   : > { %503 = vst.msk [vmem:[#allocation2] sm:$0xff] %vm189_vm2, %v502_v55  ;;  %s792_s29 = sshll.u32 %s788_s23, 4  ;;  %s793_s29 = int_to_ptr.hbm [resolvable:$true] %s792_s29 }
 0x51b   : > { %s1050_s0 = sshra.s32 %s793_s29, 4  ;;  %s1051_s0 = int_to_ptr.hbm [resolvable:$true] %s1050_s0 }
 0x51c   : > { %s1052_s4 = scalar_lea.hbm %s1051_s0, 8  ;;  %p1057_p0 = scmp.lt.s32.totalorder %s1051_s0, %s1522_s3 }
 0x51d   : > { %p1053_p11 = scmp.ne.s32.totalorder %s1051_s0, %s1052_s4  ;;  %p1058_p1 = scmp.lt.s32.totalorder %s1056_s7, %s1052_s4 }
 0x51f   : > { %p1054_p12 = pnand %p1053_p11, %p1165_p5  ;;  %p1059_p2 = por %p1058_p1, %p1057_p0 }
 0x521   : > { %v504_v56 = vld [vmem:[#allocation2] sm:$0xff]  ;;  %p1055_p13 = pneg %p1054_p12 }
 0x522   : > { %929 = vmatmul.msk.f32.vlgmr.msra.gmra.mxu1 %vm199_vm3, %v504_v56 }
 0x523   : > { %p1060_p3 = pnand %p1059_p2, %p1055_p13 }
 0x59f   : > { %v532_v0 = vpop.f32.mrf.mxu1 }
 0x5a0   : > { %v538_v2 = vmax.f32 %v537_v63, %v532_v0  ;;  %v971_v63 = vld [vmem:[%s1521_s2 + $0x2d0] sm:$0xff] }
 0x5a1   : > { %764 = vmatpush.msrb.mxu3 %v971_v63 }
 0x5a2   : > { %v540_v3 = vmin.f32 %v539_v1, %v538_v2  ;;  %v734_v2 = vstv %s970_s9 }
 0x5a4   : > { %v541_v4 = vsub.f32 %v532_v0, %v540_v3  ;;  %v732_v0 = vstv %s731_s10 }
 0x5a6   : > { %542 = vst.msk [vmem:[#allocation2] sm:$0xff] %vm189_vm2, %v541_v4 }
 0x5ad   : > { %v543_v5 = vld [vmem:[#allocation2] sm:$0xff] }
 0x5ae   : > { %937 = vmatmul.msk.f32.vlgmr.msra.gmra.mxu2 %vm199_vm3, %v543_v5 }
 0x631   : > { %v571_v13 = vpop.f32.mrf.mxu2 }
 0x632   : > { %v577_v15 = vmax.f32 %v576_v12, %v571_v13 }
 0x634   : > { %v579_v16 = vmin.f32 %v578_v14, %v577_v15 }
 0x636   : > { %v580_v17 = vsub.f32 %v571_v13, %v579_v16 }
 0x638   : > { %581 = vst.msk [vmem:[#allocation2] sm:$0xff] %vm189_vm2, %v580_v17 }
 0x63f   : > { %v582_v18 = vld [vmem:[#allocation2] sm:$0xff] }
 0x640   : > { %945 = vmatmul.msk.f32.vlgmr.msra.gmra.mxu3 %vm199_vm3, %v582_v18 }
 0x6c3   : > { %v610_v26 = vpop.f32.mrf.mxu3 }
 0x6c4   : > { %v616_v28 = vmax.f32 %v615_v25, %v610_v26 }
 0x6c6   : > { %v618_v29 = vmin.f32 %v617_v27, %v616_v28 }
 0x6c8   : > { %v619_v30 = vsub.f32 %v610_v26, %v618_v29 }
 0x6ca   : > { %620 = vst.msk [vmem:[#allocation2] sm:$0xff] %vm189_vm2, %v619_v30 }
 0x6d1   : > { %v621_v31 = vld [vmem:[#allocation2] sm:$0xff] }
 0x6d2   : > { %953 = vmatmul.msk.f32.vlgmr.msrb.gmra.mxu0 %vm199_vm3, %v621_v31 }
 0x74f   : > { %v649_v39 = vpop.f32.mrf.mxu0 }
 0x750   : > { %v655_v41 = vmax.f32 %v654_v38, %v649_v39 }
 0x752   : > { %v657_v42 = vmin.f32 %v656_v40, %v655_v41 }
 0x754   : > { %v658_v43 = vsub.f32 %v649_v39, %v657_v42 }
 0x756   : > { %659 = vst.msk [vmem:[#allocation2] sm:$0xff] %vm189_vm2, %v658_v43 }
 0x75d   : > { %v660_v44 = vld [vmem:[#allocation2] sm:$0xff] }
 0x75e   : > { %961 = vmatmul.msk.f32.vlgmr.msrb.gmra.mxu1 %vm199_vm3, %v660_v44 }
 0x7db   : > { %v688_v52 = vpop.f32.mrf.mxu1 }
 0x7dc   : > { %v694_v54 = vmax.f32 %v693_v51, %v688_v52 }
 0x7de   : > { %v696_v55 = vmin.f32 %v695_v53, %v694_v54 }
 0x7e0   : > { %v697_v56 = vsub.f32 %v688_v52, %v696_v55 }
 0x7e2   : > { %698 = vst.msk [vmem:[#allocation2] sm:$0xff] %vm189_vm2, %v697_v56 }
 0x7e9   : > { %v699_v57 = vld [vmem:[#allocation2] sm:$0xff] }
 0x7ea   : > { %969 = vmatmul.msk.f32.vlgmr.msrb.gmra.mxu2 %vm199_vm3, %v699_v57 }
 0x86d   : > { %v727_v1 = vpop.f32.mrf.mxu2 }
 0x86e   : > { %v733_v3 = vmax.f32 %v732_v0, %v727_v1 }
 0x870   : > { %v735_v4 = vmin.f32 %v734_v2, %v733_v3 }
 0x872   : > { %v736_v5 = vsub.f32 %v727_v1, %v735_v4 }
 0x874   : > { %737 = vst.msk [vmem:[#allocation2] sm:$0xff] %vm189_vm2, %v736_v5 }
 0x87b   : > { %v738_v6 = vld [vmem:[#allocation2] sm:$0xff] }
 0x87c   : > { %977 = vmatmul.msk.f32.vlgmr.msrb.gmra.mxu3 %vm199_vm3, %v738_v6 }
 0x8ff   : > { %v766_v8 = vpop.f32.mrf.mxu3 }
 0x900   : > { %v772_v10 = vmax.f32 %v771_v7, %v766_v8 }
 0x902   : > { %v774_v11 = vmin.f32 %v773_v9, %v772_v10 }
 0x904   : > { %v775_v12 = vsub.f32 %v766_v8, %v774_v11 }
 0x906   : > { %776 = vst.msk [vmem:[%s143_s27] sm:$0xff] %vm189_vm2, %v775_v12 }
 0x907   : > { %1063 = shalt.err (!%p1060_p3)
}
 0x908   : > { %983 = dma.vmem_to_hbm [thread:$0]  (%p1165_p5), %s791_s28, 128, %s793_s29, %s778_s30  }
 0x909 PF: > { %p989_p4 = scmp.ge.s32.totalorder %s1100_s19, 2  ;;  %s804_s10 = sand.u32 1, %s1088_s16  }
 0x90a   : > { %s805_s11 = scalar_lea.sflag [#allocation6], %s804_s10 }
 0x90b   : > { %p986_p7 = pnand %p989_p4, %p1169_p6 }
 0x90d   : > { %p987_p8 = pneg %p986_p7 }
 0x90f   : > { %1083 = dma.done.wait (%p987_p8), %s805_s11, 128  }
 0x910   : > { %1085 = vsyncadd (%p987_p8), %s805_s11, 4294967168  ;;  %p21_p9 = scmp.ge.s32.totalorder %s1152_s21, 6   ;;  %s1525_s16 = smov %s1092_s17 }
 0x911   : > { %s1526_s17 = smov %s1096_s18  ;;  %s1527_s18 = smov %s1163_s24 }
 0x912   : > { %s1528_s19 = smov %s1152_s21  ;;  %23 = sbr.rel (!%p21_p9) target bundleno = 9 (0x9), region = 78 }
 0x917   :  { %811 = vsyncpa [#allocation6], 1 }
 0x918   :  { %813 = vsyncpa [#allocation6 + $0x1], 1 }

</bundles_post_ra>
